<compile_context>
chip_gen: v7x
topology: tpu7x:2x2x1
jax: 0.10.0
libtpu: 0.0.40
codegen_flags: <defaults>
</compile_context>

<pallas_src>
import jax
import jax.numpy as jnp
from jax.experimental import pallas as pl
from jax.experimental.pallas import tpu as pltpu


def _round_up(x, m):
    return ((x + m - 1) // m) * m


def _choose_row_tile(n, max_tile):
    """Row tile: full array if it fits, else a multiple of 8 giving >=4 steps."""
    if n <= max_tile:
        return n                                   # single full-extent block
    target = _round_up(-(-n // 4), 8)              # aim for >= 4 grid steps
    return max(8, min(max_tile, target))


_VMEM_LIMIT_BYTES = 32 * 1024 * 1024               # raises v5e's 16 MiB default


# ---------------------------------------------------------------------------
# Shared per-tile compute (candidate pick + self fallback, before noise).
# ---------------------------------------------------------------------------
def _pick_and_mix(x, svt, sv2, cummat_bf16, sv, u, thr):
    """x:(TN,D) f32; svt:(D,R); sv2:(1,R); cummat:(R,R) bf16; sv:(R,D);
    u,thr:(TN,1).  Returns (TN,D) f32 = picked_candidate + self_fallback."""
    # Squared-space radius test (no sqrt):
    #   ||x - sv||^2 < thr^2   <=>   ||sv||^2 - 2 x.sv^T  <  thr^2 - ||x||^2
    # NOTE: near the radius boundary this can classify differently from the
    # torch sqrt-based compare due to float cancellation (documented tolerance).
    cross = jnp.dot(x, svt, preferred_element_type=jnp.float32)        # (TN,R) MXU
    x2 = jnp.sum(x * x, axis=1, keepdims=True)                         # (TN,1)
    hit = (sv2 - 2.0 * cross) < (thr * thr - x2)                       # (TN,R) bool
    mask_bf = hit.astype(jnp.bfloat16)

    # Inclusive lane prefix-sum via a bf16 MXU matmul against an upper-
    # triangular ones matrix.  0/1 inputs + f32 accumulation => exact integers.
    cum = jnp.dot(mask_bf, cummat_bf16,
                  preferred_element_type=jnp.float32)                  # (TN,R)
    r = cum.shape[1]
    count = cum[:, r - 1:r]                                            # (TN,1) total hits

    # torch.multinomial analogue: uniformly pick the (k+1)-th masked candidate.
    k = jnp.minimum(jnp.floor(u * count), jnp.maximum(count - 1.0, 0.0))
    sel = mask_bf.astype(jnp.float32) * (cum == k + 1.0).astype(jnp.float32)

    picked = jnp.dot(sel, sv, preferred_element_type=jnp.float32)      # (TN,D) MXU
    use_self = (count == 0.0).astype(jnp.float32)                      # "additional mask"
    return picked + use_self * x


# ---------------------------------------------------------------------------
# Kernel A: caller-supplied (streamed) noise.
# ---------------------------------------------------------------------------
def _forward_sample_kernel_stream(x_ref, sv_ref, svt_ref, sv2_ref, cummat_ref,
                                  side_ref, noise_ref, out_ref):
    side = side_ref[...]                                     # (TN,3) [u, thr, nco]
    u, thr, nco = side[:, 0:1], side[:, 1:2], side[:, 2:3]
    base = _pick_and_mix(x_ref[...], svt_ref[...], sv2_ref[...],
                         cummat_ref[...], sv_ref[...], u, thr)
    out_ref[...] = base + nco * noise_ref[...]


# ---------------------------------------------------------------------------
# Kernel B: noise generated in-kernel (no (N,D) noise HBM stream).
# ---------------------------------------------------------------------------
def _forward_sample_kernel_prng(seed_ref, x_ref, sv_ref, svt_ref, sv2_ref,
                                cummat_ref, side_ref, out_ref):
    # Independent stream per grid step -> safe with "parallel" semantics.
    pltpu.prng_seed(seed_ref[0] + pl.program_id(0))
    side = side_ref[...]                                     # (TN,3) [u, thr, nco]
    u, thr, nco = side[:, 0:1], side[:, 1:2], side[:, 2:3]
    base = _pick_and_mix(x_ref[...], svt_ref[...], sv2_ref[...],
                         cummat_ref[...], sv_ref[...], u, thr)
    noise = pltpu.stateful_normal(x_ref.shape, jnp.float32)  # (TN,D)
    out_ref[...] = base + nco * noise


# ---------------------------------------------------------------------------
# pallas_call wrappers.
# ---------------------------------------------------------------------------
def _forward_sample_pallas_stream(x_flat, sv, sv_t, sv2, cummat, side,
                                  noise_flat, *, tn):
    n, d = x_flat.shape
    r = sv.shape[0]
    grid = ((n + tn - 1) // tn,)         # ragged last block clipped by Pallas
    return pl.pallas_call(
        _forward_sample_kernel_stream,
        out_shape=jax.ShapeDtypeStruct((n, d), jnp.float32),
        grid=grid,
        in_specs=[
            pl.BlockSpec((tn, d), lambda i: (i, 0)),   # x rows        (pipelined)
            pl.BlockSpec((r, d), lambda i: (0, 0)),    # sv            (resident)
            pl.BlockSpec((d, r), lambda i: (0, 0)),    # sv_t          (resident)
            pl.BlockSpec((1, r), lambda i: (0, 0)),    # ||sv||^2      (resident)
            pl.BlockSpec((r, r), lambda i: (0, 0)),    # tri-ones bf16 (resident)
            pl.BlockSpec((tn, 3), lambda i: (i, 0)),   # [u, thr, nco] side input
            pl.BlockSpec((tn, d), lambda i: (i, 0)),   # noise rows
        ],
        out_specs=pl.BlockSpec((tn, d), lambda i: (i, 0)),
        compiler_params=pltpu.CompilerParams(
            dimension_semantics=("parallel",),
            vmem_limit_bytes=_VMEM_LIMIT_BYTES),
    )(x_flat, sv, sv_t, sv2, cummat, side, noise_flat)


def _forward_sample_pallas_prng(seed, x_flat, sv, sv_t, sv2, cummat, side, *, tn):
    n, d = x_flat.shape
    r = sv.shape[0]
    grid = ((n + tn - 1) // tn,)
    return pl.pallas_call(
        _forward_sample_kernel_prng,
        out_shape=jax.ShapeDtypeStruct((n, d), jnp.float32),
        grid_spec=pltpu.PrefetchScalarGridSpec(
            num_scalar_prefetch=1,                    # seed lands in SMEM
            grid=grid,
            in_specs=[
                pl.BlockSpec((tn, d), lambda i, s: (i, 0)),
                pl.BlockSpec((r, d), lambda i, s: (0, 0)),
                pl.BlockSpec((d, r), lambda i, s: (0, 0)),
                pl.BlockSpec((1, r), lambda i, s: (0, 0)),
                pl.BlockSpec((r, r), lambda i, s: (0, 0)),
                pl.BlockSpec((tn, 3), lambda i, s: (i, 0)),
            ],
            out_specs=pl.BlockSpec((tn, d), lambda i, s: (i, 0)),
        ),
        compiler_params=pltpu.CompilerParams(
            dimension_semantics=("parallel",),
            vmem_limit_bytes=_VMEM_LIMIT_BYTES),
    )(seed, x_flat, sv, sv_t, sv2, cummat, side)


# ---------------------------------------------------------------------------
# Module wrapper: deterministic, synthetic replacement for the torch module's
# data-dependent __init__ (no h5py, no replay buffer).
# ---------------------------------------------------------------------------
class GaussianDiffusionPallas:
    # Rows per grid step.  At D=16, R=128 the per-tile footprint at 2048 rows
    # (lane-padded streams + (TN,R) intermediates + resident constants) is
    # ~13 MiB, inside the 32 MiB scoped limit set above on every generation.
    # Constant blocks could additionally be single-buffered (pl.Buffered(1))
    # for extra headroom on v7x, but are negligible (<200 KiB) at this size.
    MAX_ROW_TILE = 2048

    def __init__(self, horizon, observation_dim, action_dim,
                 n_timesteps=16, n_buffer=128,
                 forward_sample_noise=0.1,
                 action_weight=1.0, loss_discount=1.0, loss_weights=None,
                 seed=0, use_inkernel_noise=True):
        self.horizon = horizon
        self.observation_dim = observation_dim
        self.action_dim = action_dim
        self.transition_dim = observation_dim + action_dim
        self.n_timesteps = int(n_timesteps)
        self._use_inkernel_noise = bool(use_inkernel_noise)

        key = jax.random.PRNGKey(seed)
        k_buf, k_rng = jax.random.split(key)

        # Deterministic stand-in for the kmeans replay-buffer centroids.
        sv = jax.random.normal(
            k_buf, (n_buffer, self.transition_dim), dtype=jnp.float32)
        self.action_state_kmeans = sv
        # Constants hoisted out of the kernel:
        self._sv_t = sv.T                                        # (D, R) lane-dense
        self._sv2 = jnp.sum(sv * sv, axis=1)[None, :]            # (1, R)
        # Upper-triangular ones (inclusive prefix sum) stored bf16: 0/1 entries
        # are exact and the kernel accumulates in f32, so results are exact.
        self._cummat = jnp.triu(
            jnp.ones((n_buffer, n_buffer), dtype=jnp.float32)).astype(jnp.bfloat16)

        # Schedules: linspace(0, max possible distance, T) as in __init__,
        # with the "dataset" bounds taken from the synthetic buffer itself.
        max_v = jnp.max(sv, axis=0)
        min_v = jnp.min(sv, axis=0)
        max_possible_distance = jnp.linalg.norm(max_v - min_v)
        self.distance_schedule = jnp.linspace(
            0.0, max_possible_distance, n_timesteps, dtype=jnp.float32)
        self.noise_schedule = jnp.linspace(
            0.0, forward_sample_noise, n_timesteps, dtype=jnp.float32)

        self.loss_weights = self.get_loss_weights(
            action_weight, loss_discount, loss_weights)
        self._key = k_rng

    # ---- plain-JAX glue (mirrors the torch einsum code) ----
    def get_loss_weights(self, action_weight, discount, weights_dict):
        dim_weights = jnp.ones((self.transition_dim,), dtype=jnp.float32)
        if weights_dict is None:
            weights_dict = {}
        for ind, w in weights_dict.items():
            dim_weights = dim_weights.at[self.action_dim + ind].multiply(w)
        discounts = discount ** jnp.arange(self.horizon, dtype=jnp.float32)
        discounts = discounts / discounts.mean()
        loss_weights = jnp.einsum('h,t->ht', discounts, dim_weights)
        loss_weights = loss_weights.at[0, :self.action_dim].set(action_weight)
        return loss_weights

    # ---- hot path: Pallas kernel ----
    def forward_sample(self, x_start, t, noise=None, key=None):
        """x_start: (B, H, D) f32, t: (B,) int32.

        Pass `key` explicitly when calling under jax.jit; the internal
        self._key split is a Python-side convenience only.
        """
        b, h, d = x_start.shape
        assert d == self.transition_dim
        n = b * h

        if key is None:
            self._key, key = jax.random.split(self._key)
        k_u, k_noise, k_seed = jax.random.split(key, 3)

        # One uniform per row — the only randomness the multinomial pick needs.
        u = jax.random.uniform(k_u, (n, 1), dtype=jnp.float32)
        # extract(schedule, t, shape): one per-batch scalar per flattened row.
        thr = jnp.repeat(self.distance_schedule[t], h).reshape(n, 1)
        nco = jnp.repeat(self.noise_schedule[t], h).reshape(n, 1)
        side = jnp.concatenate([u, thr, nco], axis=1)          # (n, 3)

        x_flat = x_start.reshape(n, d).astype(jnp.float32)
        tn = _choose_row_tile(n, self.MAX_ROW_TILE)

        if noise is None and self._use_inkernel_noise:
            seed = jax.random.randint(
                k_seed, (1,), 0, jnp.iinfo(jnp.int32).max, dtype=jnp.int32)
            try:
                out = _forward_sample_pallas_prng(
                    seed, x_flat, self.action_state_kmeans, self._sv_t,
                    self._sv2, self._cummat, side, tn=tn)
                out = jax.block_until_ready(out)
                return out.reshape(b, h, d)
            except Exception:
                # Stateful PRNG primitives unavailable (older jax / interpret
                # mode): fall back permanently to the streamed-noise kernel.
                self._use_inkernel_noise = False

        if noise is None:
            noise = jax.random.normal(k_noise, x_start.shape, dtype=jnp.float32)
        noise_flat = noise.reshape(n, d).astype(jnp.float32)

        out = _forward_sample_pallas_stream(
            x_flat, self.action_state_kmeans, self._sv_t, self._sv2,
            self._cummat, side, noise_flat, tn=tn)
        return out.reshape(b, h, d)

    # TODO(synk): backward_sample / backward_sample_loop / conditional_sample
    # require the external denoising model `self.model` and the replay-buffer
    # sampler; they are drivers around forward_sample and are not implemented.
    def forward(self, *args, **kwargs):
        raise NotImplementedError(
            "conditional_sample needs the external denoising model")


if __name__ == "__main__":
    # Small shapes consistent with the module: B=2 trajectories of horizon 8,
    # observation_dim=12, action_dim=4 -> transition_dim=16; buffer of 128
    # candidate transitions; 16 diffusion timesteps.
    B, H, OBS, ACT = 2, 8, 12, 4
    T, R = 16, 128

    gd = GaussianDiffusionPallas(
        horizon=H, observation_dim=OBS, action_dim=ACT,
        n_timesteps=T, n_buffer=R, seed=0)

    key = jax.random.PRNGKey(0)
    kx, kt, kn, ku = jax.random.split(key, 4)
    x_start = jax.random.normal(kx, (B, H, OBS + ACT), dtype=jnp.float32)
    t = jax.random.randint(kt, (B,), 1, T, dtype=jnp.int32)
    noise = jax.random.normal(kn, (B, H, OBS + ACT), dtype=jnp.float32)

    n = B * H

    # ---- Path 1: explicit (streamed) noise — deterministic sanity check ----
    x_hat = gd.forward_sample(x_start, t, noise=noise, key=ku)
    x_hat = jax.block_until_ready(x_hat)
    assert x_hat.shape == (B, H, OBS + ACT)
    assert bool(jnp.all(jnp.isfinite(x_hat)))

    # Sanity: after removing the scheduled noise, every row must equal either
    # one of the buffer candidates or its own input row (count==0 fallback).
    nco = jnp.repeat(gd.noise_schedule[t], H).reshape(n, 1)
    base = x_hat.reshape(n, -1) - nco * noise.reshape(n, -1)
    cands = jnp.concatenate(
        [gd.action_state_kmeans, x_start.reshape(n, -1)], axis=0)
    dmat = jnp.linalg.norm(base[:, None, :] - cands[None, :, :], axis=-1)
    assert bool(jnp.all(jnp.min(dmat, axis=1) < 1e-3))

    # ---- Path 2: noise=None — in-kernel PRNG (or streamed fallback) ----
    x_hat2 = gd.forward_sample(x_start, t, key=ku)
    x_hat2 = jax.block_until_ready(x_hat2)
    assert x_hat2.shape == (B, H, OBS + ACT)
    assert bool(jnp.all(jnp.isfinite(x_hat2)))
    # Loose check: scheduled noise is small (<=0.1 std per dim), so every row
    # must stay close to some candidate or to its own input row.
    d2 = jnp.linalg.norm(
        x_hat2.reshape(n, -1)[:, None, :] - cands[None, :, :], axis=-1)
    assert bool(jnp.all(jnp.min(d2, axis=1) < 3.0))

    print("KERNEL_OK")
</pallas_src>

<mosaic_0001>
module attributes {stable_mosaic.version = 11 : i64} {
  func.func @_forward_sample_kernel_stream(%arg0: i32, %arg1: memref<16x16xf32, #tpu.memory_space<vmem>>, %arg2: memref<128x16xf32, #tpu.memory_space<vmem>>, %arg3: memref<16x128xf32, #tpu.memory_space<vmem>>, %arg4: memref<1x128xf32, #tpu.memory_space<vmem>>, %arg5: memref<128x128xbf16, #tpu.memory_space<vmem>>, %arg6: memref<16x3xf32, #tpu.memory_space<vmem>>, %arg7: memref<16x16xf32, #tpu.memory_space<vmem>>, %arg8: memref<16x16xf32, #tpu.memory_space<vmem>>) attributes {dimension_semantics = [#tpu.dimension_semantics<parallel>], iteration_bounds = array<i64: 1>, scalar_prefetch = 0 : i64, scratch_operands = 0 : i64, tpu.core_type = #tpu.core_type<tc>, window_params = [{transform_indices = @transform_0, window_bounds = array<i64: 16, 16>}, {pipeline_mode = #tpu.pipeline_mode<synchronous>, transform_indices = @transform_1, window_bounds = array<i64: 128, 16>}, {pipeline_mode = #tpu.pipeline_mode<synchronous>, transform_indices = @transform_2, window_bounds = array<i64: 16, 128>}, {pipeline_mode = #tpu.pipeline_mode<synchronous>, transform_indices = @transform_3, window_bounds = array<i64: 1, 128>}, {pipeline_mode = #tpu.pipeline_mode<synchronous>, transform_indices = @transform_4, window_bounds = array<i64: 128, 128>}, {transform_indices = @transform_5, window_bounds = array<i64: 16, 3>}, {transform_indices = @transform_6, window_bounds = array<i64: 16, 16>}, {transform_indices = @transform_7, window_bounds = array<i64: 16, 16>}]} {
    %c0 = arith.constant 0 : index
    %c0_0 = arith.constant 0 : index
    %0 = vector.load %arg6[%c0, %c0_0] : memref<16x3xf32, #tpu.memory_space<vmem>>, vector<16x3xf32>
    %1 = vector.extract_strided_slice %0 {offsets = [0, 0], sizes = [16, 1], strides = [1, 1]} : vector<16x3xf32> to vector<16x1xf32>
    %2 = vector.extract_strided_slice %0 {offsets = [0, 1], sizes = [16, 1], strides = [1, 1]} : vector<16x3xf32> to vector<16x1xf32>
    %3 = vector.extract_strided_slice %0 {offsets = [0, 2], sizes = [16, 1], strides = [1, 1]} : vector<16x3xf32> to vector<16x1xf32>
    %c0_1 = arith.constant 0 : index
    %c0_2 = arith.constant 0 : index
    %4 = vector.load %arg1[%c0_1, %c0_2] : memref<16x16xf32, #tpu.memory_space<vmem>>, vector<16x16xf32>
    %c0_3 = arith.constant 0 : index
    %c0_4 = arith.constant 0 : index
    %5 = vector.load %arg3[%c0_3, %c0_4] : memref<16x128xf32, #tpu.memory_space<vmem>>, vector<16x128xf32>
    %c0_5 = arith.constant 0 : index
    %c0_6 = arith.constant 0 : index
    %6 = vector.load %arg4[%c0_5, %c0_6] : memref<1x128xf32, #tpu.memory_space<vmem>>, vector<1x128xf32>
    %c0_7 = arith.constant 0 : index
    %c0_8 = arith.constant 0 : index
    %7 = vector.load %arg5[%c0_7, %c0_8] : memref<128x128xbf16, #tpu.memory_space<vmem>>, vector<128x128xbf16>
    %c0_9 = arith.constant 0 : index
    %c0_10 = arith.constant 0 : index
    %8 = vector.load %arg2[%c0_9, %c0_10] : memref<128x16xf32, #tpu.memory_space<vmem>>, vector<128x16xf32>
    %cst = arith.constant dense<0.000000e+00> : vector<16x128xf32>
    %9 = tpu.matmul %4, %5, %cst {dimension_numbers = #tpu.dot_dimension_numbers<[1], [0], [0], [1], [0, 0, 1, 1], [], []>} : vector<16x16xf32>, vector<16x128xf32>, vector<16x128xf32> -> vector<16x128xf32>
    %10 = arith.mulf %4, %4 : vector<16x16xf32>
    %cst_11 = arith.constant dense<0.000000e+00> : vector<16xf32>
    %11 = vector.multi_reduction <add>, %10, %cst_11 [1] : vector<16x16xf32> to vector<16xf32>
    %12 = vector.shape_cast %11 : vector<16xf32> to vector<16x1xf32>
    %cst_12 = arith.constant 2.000000e+00 : f32
    %13 = vector.broadcast %cst_12 : f32 to vector<16x128xf32>
    %14 = arith.mulf %13, %9 : vector<16x128xf32>
    %15 = vector.broadcast %6 : vector<1x128xf32> to vector<16x128xf32>
    %16 = arith.subf %15, %14 : vector<16x128xf32>
    %17 = arith.mulf %2, %2 : vector<16x1xf32>
    %18 = arith.subf %17, %12 : vector<16x1xf32>
    %19 = vector.broadcast %18 : vector<16x1xf32> to vector<16x128xf32>
    %20 = arith.cmpf olt, %16, %19 : vector<16x128xf32>
    %21 = arith.extui %20 : vector<16x128xi1> to vector<16x128xi32>
    %22 = arith.sitofp %21 : vector<16x128xi32> to vector<16x128xf32>
    %23 = arith.truncf %22 : vector<16x128xf32> to vector<16x128xbf16>
    %cst_13 = arith.constant dense<0.000000e+00> : vector<16x128xf32>
    %24 = tpu.matmul %23, %7, %cst_13 {dimension_numbers = #tpu.dot_dimension_numbers<[1], [0], [0], [1], [0, 0, 1, 1], [], []>} : vector<16x128xbf16>, vector<128x128xbf16>, vector<16x128xf32> -> vector<16x128xf32>
    %25 = vector.extract_strided_slice %24 {offsets = [0, 127], sizes = [16, 1], strides = [1, 1]} : vector<16x128xf32> to vector<16x1xf32>
    %26 = arith.mulf %1, %25 : vector<16x1xf32>
    %27 = math.floor %26 : vector<16x1xf32>
    %cst_14 = arith.constant 1.000000e+00 : f32
    %28 = vector.broadcast %cst_14 : f32 to vector<16x1xf32>
    %29 = arith.subf %25, %28 : vector<16x1xf32>
    %cst_15 = arith.constant 0.000000e+00 : f32
    %30 = vector.broadcast %cst_15 : f32 to vector<16x1xf32>
    %31 = arith.maximumf %29, %30 : vector<16x1xf32>
    %32 = arith.minimumf %27, %31 : vector<16x1xf32>
    %33 = arith.extf %23 : vector<16x128xbf16> to vector<16x128xf32>
    %cst_16 = arith.constant 1.000000e+00 : f32
    %34 = vector.broadcast %cst_16 : f32 to vector<16x1xf32>
    %35 = arith.addf %32, %34 : vector<16x1xf32>
    %36 = vector.broadcast %35 : vector<16x1xf32> to vector<16x128xf32>
    %37 = arith.cmpf oeq, %24, %36 : vector<16x128xf32>
    %38 = arith.extui %37 : vector<16x128xi1> to vector<16x128xi32>
    %39 = arith.sitofp %38 : vector<16x128xi32> to vector<16x128xf32>
    %40 = arith.mulf %33, %39 : vector<16x128xf32>
    %cst_17 = arith.constant dense<0.000000e+00> : vector<16x16xf32>
    %41 = tpu.matmul %40, %8, %cst_17 {dimension_numbers = #tpu.dot_dimension_numbers<[1], [0], [0], [1], [0, 0, 1, 1], [], []>} : vector<16x128xf32>, vector<128x16xf32>, vector<16x16xf32> -> vector<16x16xf32>
    %cst_18 = arith.constant 0.000000e+00 : f32
    %42 = vector.broadcast %cst_18 : f32 to vector<16x1xf32>
    %43 = arith.cmpf oeq, %25, %42 : vector<16x1xf32>
    %44 = arith.extui %43 : vector<16x1xi1> to vector<16x1xi32>
    %45 = arith.sitofp %44 : vector<16x1xi32> to vector<16x1xf32>
    %46 = vector.broadcast %45 : vector<16x1xf32> to vector<16x16xf32>
    %47 = arith.mulf %46, %4 : vector<16x16xf32>
    %48 = arith.addf %41, %47 : vector<16x16xf32>
    %c0_19 = arith.constant 0 : index
    %c0_20 = arith.constant 0 : index
    %49 = vector.load %arg7[%c0_19, %c0_20] : memref<16x16xf32, #tpu.memory_space<vmem>>, vector<16x16xf32>
    %50 = vector.broadcast %3 : vector<16x1xf32> to vector<16x16xf32>
    %51 = arith.mulf %50, %49 : vector<16x16xf32>
    %52 = arith.addf %48, %51 : vector<16x16xf32>
    %c0_21 = arith.constant 0 : index
    %c0_22 = arith.constant 0 : index
    %53 = vector.load %arg8[%c0_21, %c0_22] : memref<16x16xf32, #tpu.memory_space<vmem>>, vector<16x16xf32>
    tpu.vector_store %arg8[%c0_21, %c0_22], %52 {strides = array<i32>} : memref<16x16xf32, #tpu.memory_space<vmem>>, vector<16x16xf32>,
    return
  }
  func.func @transform_0(%arg0: i32) -> (i32, i32) {
    %c0_i32 = arith.constant 0 : i32
    %c0_i32_0 = arith.constant 0 : i32
    return %arg0, %c0_i32 : i32, i32
  }
  func.func @transform_1(%arg0: i32) -> (i32, i32) {
    %c0_i32 = arith.constant 0 : i32
    %c0_i32_0 = arith.constant 0 : i32
    %c0_i32_1 = arith.constant 0 : i32
    return %c0_i32, %c0_i32_0 : i32, i32
  }
  func.func @transform_2(%arg0: i32) -> (i32, i32) {
    %c0_i32 = arith.constant 0 : i32
    %c0_i32_0 = arith.constant 0 : i32
    %c0_i32_1 = arith.constant 0 : i32
    return %c0_i32, %c0_i32_0 : i32, i32
  }
  func.func @transform_3(%arg0: i32) -> (i32, i32) {
    %c0_i32 = arith.constant 0 : i32
    %c0_i32_0 = arith.constant 0 : i32
    %c0_i32_1 = arith.constant 0 : i32
    return %c0_i32, %c0_i32_0 : i32, i32
  }
  func.func @transform_4(%arg0: i32) -> (i32, i32) {
    %c0_i32 = arith.constant 0 : i32
    %c0_i32_0 = arith.constant 0 : i32
    %c0_i32_1 = arith.constant 0 : i32
    return %c0_i32, %c0_i32_0 : i32, i32
  }
  func.func @transform_5(%arg0: i32) -> (i32, i32) {
    %c0_i32 = arith.constant 0 : i32
    %c0_i32_0 = arith.constant 0 : i32
    return %arg0, %c0_i32 : i32, i32
  }
  func.func @transform_6(%arg0: i32) -> (i32, i32) {
    %c0_i32 = arith.constant 0 : i32
    %c0_i32_0 = arith.constant 0 : i32
    return %arg0, %c0_i32 : i32, i32
  }
  func.func @transform_7(%arg0: i32) -> (i32, i32) {
    %c0_i32 = arith.constant 0 : i32
    %c0_i32_0 = arith.constant 0 : i32
    return %arg0, %c0_i32 : i32, i32
  }
}

</mosaic_0001>

<bundles_post_ra>
// kernel: tpu_custom_call.1
= control target key start
LH: loop header
LB: loop body
LE: loop exit
PB: predicated region body
PF: predicated region fallthrough
CT: control target
= control target key end

     0   :  { %vm67_vm0 = vcmask 130048   ;;  %s896_s0 = inlined_call_operand.vmem [shape: f32[16,16], index: 0, kind: input, shape index: {}]   ;;  %s897_s1 = inlined_call_operand.vmem [shape: f32[128,16], index: 1, kind: input, shape index: {}]   ;;  %s898_s2 = inlined_call_operand.vmem [shape: f32[16,128], index: 2, kind: input, shape index: {}]   ;;  %s899_s3 = inlined_call_operand.vmem [shape: f32[1,128], index: 3, kind: input, shape index: {}]   ;;  %s900_s4 = inlined_call_operand.vmem [shape: bf16[128,128], index: 4, kind: input, shape index: {}]   ;;  %s901_s5 = inlined_call_operand.vmem [shape: f32[16,3], index: 5, kind: input, shape index: {}]   ;;  %s902_s6 = inlined_call_operand.vmem [shape: f32[16,16], index: 6, kind: input, shape index: {}]   ;;  %s903_s7 = inlined_call_operand.hbm [shape: f32[16,16], index: 7, kind: output, shape index: {}]  }
   0x1   :  { %v709_v0 = vld [vmem:[%s896_s0] sm:$0xff]  ;;  %v714_v1 = vld [vmem:[%s896_s0 + $0x8] sm:$0xff] }
   0x2   :  { %v32_v2 = vld [vmem:[%s898_s2] sm:$0xff]  ;;  %v149_v3 = vmul.f32 %v709_v0, %v709_v0  ;;  %v150_v4 = vmul.f32 %v714_v1, %v714_v1  ;;  %v33_v5 = vld [vmem:[%s898_s2 + $0x8] sm:$0xff]  ;;  %508 = vmatprep.mubr.msk.f32.mxu0 %vm67_vm0, %v709_v0 }
   0x3   :  { %v566_v6 = vpack.c.bf16 %v33_v5, %v32_v2 }
   0x4   :  { %v151_v7 = vsel %vm67_vm0, %v149_v3, 0.0  ;;  %v154_v8 = vsel %vm67_vm0, %v150_v4, 0.0 }
   0x5   :  { %152 = vadd.xlane.f32.xlu0 %v151_v7  ;;  %567 = vmatprep.subr.bf16.mxu0 %v566_v6 }
   0x6   :  { %569 = vmatpush3.bf16.msra.mxu0 %v566_v6 }
   0x7   :  { %12 = vsyncpa [#allocation3], 0  ;;  %v655_v9 = vmov 1   ;;  %v623_v10 = vld [vmem:[%s900_s4] sm:$0xff]   ;;  %v656_v11 = vmov 0.0   ;;  %v624_v12 = vld [vmem:[%s900_s4 + $0x8] sm:$0xff]  }
   0x8   :  { %613 = vset.pattern.permute.xlu1 %v655_v9  ;;  %511 = vmatprep.subr.bf16.mxu1 %v656_v11  ;;  %v625_v13 = vld [vmem:[%s900_s4 + $0x10] sm:$0xff]   ;;  %v626_v14 = vld [vmem:[%s900_s4 + $0x18] sm:$0xff]   ;;  %v627_v15 = vld [vmem:[%s900_s4 + $0x20] sm:$0xff]   ;;  %vm657_vm1 = vmmov 0   ;;  %v658_v38 = vmov 1.0|1.0  }
   0x9   :  { %155 = vadd.xlane.f32.xlu0 %v154_v8  ;;  %509 = vmatmul.mubr.msk.f32.vlgmr.msra.gmra.mrb[0].mxu0 %vm67_vm0, %v714_v1  ;;  %v628_v16 = vld [vmem:[%s900_s4 + $0x28] sm:$0xff]   ;;  %v629_v17 = vld [vmem:[%s900_s4 + $0x30] sm:$0xff]   ;;  %v764_v18 = vld [vmem:[%s901_s5] sm:$0xff]  ;;  %v659_v39 = vmov 0   ;;  %s663_s9 = smov [#allocation2]  }
   0xa   :  { %512 = vmatpush3.bf16.msra.mxu1 %v623_v10  ;;  %v167_v19 = vmul.f32 %v764_v18, %v764_v18  ;;  %v771_v20 = vld [vmem:[%s901_s5 + $0x8] sm:$0xff]  ;;  %v630_v25 = vld [vmem:[%s900_s4 + $0x38] sm:$0xff]   ;;  %527 = vmatprep.mubr.msk.bf16.mxu1 %vm657_vm1, %v656_v11  ;;  %v454_v31 = vld [vmem:[%s899_s3] ss:$0 sm:$0xff]  ;;  %s660_s3 = smov 1   ;;  %s441_s10 = sshll.u32 %s663_s9, 4  ;;  %s442_s10 = int_to_ptr.vmem [resolvable:$true] %s441_s10 }
   0xb   :  { %513 = vmatprep.subr.bf16.mxu1 %v656_v11  ;;  %v168_v23 = vmul.f32 %v771_v20, %v771_v20  ;;  %v51_v50 = vld [vmem:[%s897_s1] sm:$0xff]  ;;  %v52_v51 = vld [vmem:[%s897_s1 + $0x8] sm:$0xff]  ;;  %v53_v52 = vld [vmem:[%s897_s1 + $0x10] sm:$0xff]  ;;  %p636_p1 = scmp.lt.s32.totalorder %s442_s10, %s442_s10 }
   0xc   :  { %v570_v53 = vpack.c.bf16 %v52_v51, %v51_v50  ;;  %v54_v54 = vld [vmem:[%s897_s1 + $0x18] sm:$0xff]  ;;  %v55_v57 = vld [vmem:[%s897_s1 + $0x20] sm:$0xff]  ;;  %v56_v58 = vld [vmem:[%s897_s1 + $0x28] sm:$0xff] }
   0xd   :  { %v574_v56 = vpack.c.bf16 %v54_v54, %v53_v52  ;;  %v578_v59 = vpack.c.bf16 %v56_v58, %v55_v57  ;;  %v57_v60 = vld [vmem:[%s897_s1 + $0x30] sm:$0xff]  ;;  %v58_v61 = vld [vmem:[%s897_s1 + $0x38] sm:$0xff]  ;;  %v59_v63 = vld [vmem:[%s897_s1 + $0x40] sm:$0xff] }
   0xe   :  { %514 = vmatpush3.bf16.msra.mxu1 %v624_v12  ;;  %571 = vmatprep.subr.bf16.mxu0 %v570_v53  ;;  %v582_v62 = vpack.c.bf16 %v58_v61, %v57_v60  ;;  %v60_v2 = vld [vmem:[%s897_s1 + $0x48] sm:$0xff]  ;;  %v61_v4 = vld [vmem:[%s897_s1 + $0x50] sm:$0xff]  ;;  %v62_v5 = vld [vmem:[%s897_s1 + $0x58] sm:$0xff] }
   0xf   :  { %515 = vmatprep.subr.bf16.mxu1 %v656_v11  ;;  %573 = vmatpush3.bf16.msra.mxu0 %v570_v53  ;;  %v586_v3 = vpack.c.bf16 %v60_v2, %v59_v63  ;;  %v590_v6 = vpack.c.bf16 %v62_v5, %v61_v4  ;;  %v419_v36 = vld [vmem:[%s902_s6 + $0x8] sm:$0xff] }
  0x10   :  { %575 = vmatprep.subr.bf16.mxu0 %v574_v56 }
  0x12   :  { %516 = vmatpush3.bf16.msra.mxu1 %v625_v13 }
  0x13   :  { %517 = vmatprep.subr.bf16.mxu1 %v656_v11  ;;  %577 = vmatpush3.bf16.msra.mxu0 %v574_v56 }
  0x14   :  { %579 = vmatprep.subr.bf16.mxu0 %v578_v59 }
  0x16   :  { %518 = vmatpush3.bf16.msra.mxu1 %v626_v14 }
  0x17   :  { %519 = vmatprep.subr.bf16.mxu1 %v656_v11  ;;  %581 = vmatpush3.bf16.msra.mxu0 %v578_v59 }
  0x18   :  { %583 = vmatprep.subr.bf16.mxu0 %v582_v62 }
  0x1a   :  { %520 = vmatpush3.bf16.msra.mxu1 %v627_v15  ;;  %v63_v15 = vld [vmem:[%s897_s1 + $0x60] sm:$0xff] }
  0x1b   :  { %521 = vmatprep.subr.bf16.mxu1 %v656_v11  ;;  %585 = vmatpush3.bf16.msra.mxu0 %v582_v62 }
  0x1c   :  { %587 = vmatprep.subr.bf16.mxu0 %v586_v3 }
  0x1e   :  { %522 = vmatpush3.bf16.msra.mxu1 %v628_v16  ;;  %v64_v16 = vld [vmem:[%s897_s1 + $0x68] sm:$0xff] }
  0x1f   :  { %523 = vmatprep.subr.bf16.mxu1 %v656_v11  ;;  %589 = vmatpush3.bf16.msra.mxu0 %v586_v3 }
  0x20   :  { %591 = vmatprep.subr.bf16.mxu0 %v590_v6 }
  0x22   :  { %524 = vmatpush3.bf16.msra.mxu1 %v629_v17 }
  0x23   :  { %525 = vmatprep.subr.bf16.mxu1 %v656_v11  ;;  %593 = vmatpush3.bf16.msra.mxu0 %v590_v6 }
  0x26   :  { %526 = vmatpush3.bf16.msra.mxu1 %v630_v25  ;;  %v66_v25 = vld [vmem:[%s897_s1 + $0x78] sm:$0xff] }
  0x92   :  { %v153_v21 = vpop.xlane.xlu0 %152 }
  0x93   :  { %v169_v22 = vsub.f32 %v167_v19, %v153_v21  ;;  %v594_v21 = vpack.c.bf16 %v64_v16, %v63_v15 }
  0x95   :  { %173 = vperm.xlu1 %613, %v169_v22   ;;  %595 = vmatprep.subr.bf16.mxu0 %v594_v21 }
  0x96   :  { %v156_v24 = vpop.xlane.xlu0 %155  ;;  %597 = vmatpush3.bf16.msra.mxu0 %v594_v21 }
  0x97   :  { %v170_v26 = vsub.f32 %v168_v23, %v156_v24  ;;  %v65_v24 = vld [vmem:[%s897_s1 + $0x70] sm:$0xff] }
  0x99   :  { %178 = vperm.xlu1 %613, %v170_v26  }
  0x9d   :  { %614 = vset.pattern.permute.xlu1 %v659_v39 }
  0xdc   :  { %v510_v27 = vpop.f32.mrb[0].mxu0 }
  0xdd   :  { %v140_v28 = vpop.f32.mrb[1].mxu0  ;;  %v158_v29 = vmul.f32 2.0, %v510_v27  ;;  %v598_v27 = vpack.c.bf16 %v66_v25, %v65_v24 }
  0xde   :  { %v157_v30 = vmul.f32 2.0, %v140_v28  ;;  %v661_v28 = vmov 127  }
  0xdf   :  { %v166_v34 = vsub.f32 %v454_v31, %v158_v29  ;;  %599 = vmatprep.subr.bf16.mxu0 %v598_v27  ;;  %v662_v29 = vmov 2  }
  0xe0   :  { %v165_v33 = vsub.f32 %v454_v31, %v157_v30  ;;  %601 = vmatpush3.bf16.msra.mxu0 %v598_v27  ;;  %621 = vset.pattern.permute.xlu0 %v662_v29 }
 0x114   :  { %v174_v32 = vpop.permute.xlu1 %173 }
 0x115   :  { %vm782_vm2 = vcmp.lt.f32.partialorder %v165_v33, %v174_v32 }
 0x116   :  { %v455_v31 = vsel %vm782_vm2, 1.0, %v656_v11 }
 0x118   :  { %v179_v35 = vpop.permute.xlu1 %178 }
 0x119   :  { %vm786_vm3 = vcmp.lt.f32.partialorder %v166_v34, %v179_v35 }
 0x11a   :  { %vm465_vm4 = vmpackc.low %vm786_vm3, %vm782_vm2 }
 0x11b   :  { %528 = vmatmul.mubr.msk.bf16.vlgmr.msra.gmra.mrb[0].mxu1 %vm465_vm4, %v658_v38 }
 0x1ee   :  { %v794_v40 = vpop.f32.mrb[0].mxu1 }
 0x1ef   :  { %vm325_vm5 = vcmp.eq.f32.partialorder %v794_v40, 0.0  ;;  %279 = vrot.lane.b32.xlu0 %v794_v40, %s660_s3  ;;  %v529_v41 = vpop.f32.mrb[1].mxu1  ;;  %v467_v42 = vadd.f32 -1.0, %v794_v40 }
 0x1f0   :  { %v799_v43 = vpop.f32.mrb[2].mxu1  ;;  %v804_v45 = vsel %vm325_vm5, 1.0, %v656_v11 }
 0x1f1   :  { %vm326_vm6 = vcmp.eq.f32.partialorder %v799_v43, 0.0  ;;  %281 = vrot.lane.b32.xlu1 %v799_v43, %s660_s3  ;;  %v530_v44 = vpop.f32.mrb[3].mxu1  ;;  %v291_v47 = vmax.f32 %v467_v42, 0.0  ;;  %v468_v48 = vadd.f32 -1.0, %v799_v43  ;;  %v418_v42 = vld [vmem:[%s902_s6] sm:$0xff]  ;;  %s631_s6 = scalar_lea.vmem %s442_s10, 256 }
 0x1f2   :  { %v807_v46 = vsel %vm326_vm6, 1.0, %v656_v11  ;;  %p632_p0 = scmp.ne.s32.totalorder %s442_s10, %s631_s6  ;;  %p637_p2 = scmp.lt.s32.totalorder %s631_s6, %s631_s6 }
 0x1f3   :  { %v616_v49 = vpack.i.bf16 %v807_v46, %v804_v45  ;;  %v292_v55 = vmax.f32 %v468_v48, 0.0  ;;  %422 = vperm.xlu0 %621, %v764_v18  }
 0x1f4   :  { %p638_p3 = por %p637_p2, %p636_p1 }
 0x1f5   :  { %295 = vrot.lane.b32.xlu1 %v291_v47, %s660_s3 }
 0x1f6   :  { %p639_p4 = pnand %p638_p3, %p632_p0 }
 0x1f9   :  { %297 = vrot.lane.b32.xlu1 %v292_v55, %s660_s3 }
 0x261   :  { %v280_v7 = vpop.permute.xlu0 %279 }
 0x262   :  { %v285_v8 = vmul.f32 %v280_v7, %v764_v18  ;;  %v456_v18 = vsel %vm786_vm3, 1.0, %v656_v11 }
 0x263   :  { %v282_v9 = vpop.permute.xlu1 %281 }
 0x264   :  { %v287_v10 = vfloor.f32 %v285_v8  ;;  %v286_v12 = vmul.f32 %v282_v9, %v771_v20 }
 0x266   :  { %v288_v17 = vfloor.f32 %v286_v12 }
 0x267   :  { %v296_v13 = vpop.permute.xlu1 %295 }
 0x268   :  { %v301_v14 = vmin.f32 %v287_v10, %v296_v13 }
 0x26a   :  { %v305_v19 = vadd.f32 1.0, %v301_v14 }
 0x26b   :  { %v298_v22 = vpop.permute.xlu1 %297 }
 0x26c   :  { %v302_v23 = vmin.f32 %v288_v17, %v298_v22  ;;  %309 = vperm.xlu1 %614, %v305_v19  }
 0x26e   :  { %v306_v26 = vadd.f32 1.0, %v302_v23 }
 0x270   :  { %314 = vperm.xlu1 %614, %v306_v26  }
 0x274   :  { %615 = vset.pattern.permute.xlu1 %v661_v28 }
 0x275   :  { %617 = vperm.xlu1 %615, %v616_v49  }
 0x279   :  { %622 = vset.pattern.permute.xlu1 %v662_v29 }
 0x27a   :  { %427 = vperm.xlu1 %622, %v771_v20  }
 0x2eb   :  { %v310_v30 = vpop.permute.xlu1 %309 }
 0x2ec   :  { %vm317_vm7 = vcmp.eq.f32.partialorder %v794_v40, %v310_v30 }
 0x2ed   :  { %v469_v32 = vsel %vm317_vm7, 1.0, %v656_v11 }
 0x2ee   :  { %v323_v33 = vmul.f32 %v469_v32, %v455_v31 }
 0x2ef   :  { %v315_v34 = vpop.permute.xlu1 %314 }
 0x2f0   :  { %vm318_vm8 = vcmp.eq.f32.partialorder %v799_v43, %v315_v34  ;;  %563 = vmatprep.mubr.f32.mxu0 %v323_v33  ;;  %v423_v43 = vpop.permute.xlu0 %422 }
 0x2f1   :  { %v470_v20 = vsel %vm318_vm8, 1.0, %v656_v11  ;;  %v430_v11 = vmul.f32 %v423_v43, %v418_v42 }
 0x2f2   :  { %v324_v35 = vmul.f32 %v470_v20, %v456_v18 }
 0x2f4   :  { %564 = vmatmul.mubr.f32.vlgmr.msra.gmra.mrb[2].mxu0 %v324_v35  ;;  %v618_v38 = vpop.permute.xlu1 %617 }
 0x2f5   :  { %v620_v39 = vunpack.i.h.bf16 %v618_v38  ;;  %v619_v40 = vunpack.i.l.bf16 %v618_v38 }
 0x2f7   :  { %v342_v37 = vmul.f32 %v620_v39, %v714_v1  ;;  %v341_v46 = vmul.f32 %v619_v40, %v709_v0 }
 0x2f9   :  { %v428_v41 = vpop.permute.xlu1 %427 }
 0x2fa   :  { %v431_v44 = vmul.f32 %v428_v41, %v419_v36 }
 0x3c7   :  { %v565_v45 = vpop.f32.mrb[2].mxu0 }
 0x3c8   :  { %v415_v47 = vadd.f32 %v565_v45, %v342_v37  ;;  %v409_v48 = vpop.f32.mrb[3].mxu0 }
 0x3c9   :  { %v410_v49 = vadd.f32 %v409_v48, %v341_v46 }
 0x3ca   :  { %v433_v50 = vadd.f32 %v431_v44, %v415_v47 }
 0x3cb   :  { %v432_v51 = vadd.f32 %v430_v11, %v410_v49 }
 0x3cc   :  { %435 = vst.msk [vmem:[#allocation2 + $0x8] sm:$0xff] %vm67_vm0, %v433_v50 }
 0x3cd   :  { %434 = vst.msk [vmem:[#allocation2] sm:$0xff] %vm67_vm0, %v432_v51 }
 0x3ce   :  { %642 = shalt.err (!%p639_p4)
}
 0x3cf   :  { %s643_s13 = scalar_lea.hbm %s903_s7, 256 }
 0x3d0   :  { %p644_p5 = scmp.ne.s32.totalorder %s903_s7, %s643_s13  ;;  %p647_p6 = scmp.lt.u32.totalorder %s643_s13, %s903_s7 }
 0x3d2   :  { %p649_p7 = pnand %p647_p6, %p644_p5 }
 0x3d4   :  { %652 = shalt.err (!%p649_p7)
}
 0x3d5   :  { %s664_s18 = smov 128   ;;  %s665_s19 = smov 8  }
 0x3d6   :  { %447 = dma.vmem_to_hbm [thread:$0]  %s442_s10, 256, %s903_s7, [#allocation3], %s664_s18, %s664_s18, %s665_s19  }
 0x3d7   :  { %653 = dma.done.wait [#allocation3], 256  }
 0x3d8   :  { %654 = vsyncadd [#allocation3], 4294967040 }
 0x3d9   :  { %451 = vsyncpa [#allocation3], 1 }

</bundles_post_ra>
